<compile_context>
chip_gen: v7x
topology: tpu7x:2x2x1
jax: 0.10.0
libtpu: 0.0.40
codegen_flags: <defaults>
</compile_context>

<pallas_src>
import jax
import jax.numpy as jnp
from jax import lax
from jax.experimental import pallas as pl
from jax.experimental.pallas import tpu as pltpu


def _cdiv(a, b):
    return -(-a // b)


def _round_up(a, b):
    return _cdiv(a, b) * b


def _make_im_loss_kernel(G, TR, chunk, numel, ragged):
    """G: #soft targets, TR: rows per tile, chunk: rows per inner reduction
    step (divides TR), numel: true element count, ragged: the last tile
    contains over-read / padded elements that must be masked."""
    n_chunks = TR // chunk
    unroll = n_chunks if n_chunks <= 8 else 4
    full_rows = numel // 128          # rows that are fully valid
    rem_lanes = numel % 128           # valid lanes in the (optional) last row

    def kernel(gw_ref, x_ref, t_ref, out_ref):
        r = pl.program_id(0)

        def tile_partial(masked):
            def body(i, acc):
                start = pl.multiple_of(i * chunk, chunk)
                # x chunk: upcast once, reused across all G groups.
                xc = x_ref[pl.ds(start, chunk), :].astype(jnp.float32)
                if masked:
                    # Over-read region of a partial last block is garbage
                    # (possibly NaN/Inf) -> select (not multiply) it away
                    # before the reduction.  Row/lane comparison avoids any
                    # int32 flat-index overflow.
                    row = lax.broadcasted_iota(jnp.int32, (chunk, 128), 0)
                    lane = lax.broadcasted_iota(jnp.int32, (chunk, 128), 1)
                    grow = r * TR + start + row
                    valid = (grow < full_rows) | (
                        (grow == full_rows) & (lane < rem_lanes))
                part = jnp.zeros((8, 128), jnp.float32)
                for g in range(G):
                    tc = t_ref[g, pl.ds(start, chunk), :].astype(jnp.float32)
                    d = xc - tc
                    sq = d * d
                    if masked:
                        sq = jnp.where(valid, sq, 0.0)
                    # Lane-wise sublane-group reduction: (chunk,128)->(8,128),
                    # weighted per group; cross-lane reduce happens once in
                    # the wrapper.
                    part = part + gw_ref[g] * jnp.sum(
                        sq.reshape(chunk // 8, 8, 128), axis=0)
                return acc + part

            return lax.fori_loop(0, n_chunks, body,
                                 jnp.zeros((8, 128), jnp.float32),
                                 unroll=unroll)

        if not ragged:
            out_ref[...] = tile_partial(False)
        else:
            last = pl.num_programs(0) - 1

            @pl.when(r < last)
            def _():
                out_ref[...] = tile_partial(False)

            @pl.when(r == last)
            def _():
                out_ref[...] = tile_partial(True)

    return kernel


def im_loss_pallas(x, soft_targets, group_weight, loss_weight=1.0,
                   reduction_override=None):
    """x: array (any shape). soft_targets: (G,) + x.shape.
    group_weight: array (n, G). Returns scalar f32 loss."""
    assert reduction_override in (None, 'none', 'mean', 'sum')
    # F.mse_loss already reduces to a scalar, so every reduction mode of the
    # @weighted_loss wrapper produces the same scalar here.

    G = int(soft_targets.shape[0])
    numel = int(x.size)
    assert soft_targets.size == G * numel

    x_flat = x.reshape(-1)
    t_flat = soft_targets.reshape(G, -1)

    # Only pad up to the next multiple of 128 lanes (so the (R,128) reshape is
    # legal).  Raggedness of the row count vs TR is handled in-kernel by the
    # mask on the over-read last block -- no tile-sized jnp.pad copies.
    lane_pad = (-numel) % 128
    if lane_pad:
        # TODO(synk): this is still a numel-sized copy when numel % 128 != 0;
        # avoiding it entirely would need 1-D blocks or a manual-DMA path.
        x_flat = jnp.pad(x_flat, (0, lane_pad))
        t_flat = jnp.pad(t_flat, ((0, 0), (0, lane_pad)))
    R = (numel + lane_pad) // 128
    xr = x_flat.reshape(R, 128)
    trg = t_flat.reshape(G, R, 128)

    # ---------------- tile-size selection --------------------------------
    CHUNK = 256                        # rows per in-kernel reduction step
    VMEM_BUDGET = 24 * 1024 * 1024     # target for double-buffered blocks
    x_item = jnp.dtype(x.dtype).itemsize
    t_item = jnp.dtype(soft_targets.dtype).itemsize
    per_row = 2 * 128 * (x_item + G * t_item)   # bytes per TR row, 2 buffers
    if R <= CHUNK:
        TR = _round_up(R, 32)          # single tile; 32 covers f32/bf16/int8
        chunk = TR
    else:
        tr_budget = max(CHUNK, (VMEM_BUDGET // per_row) // CHUNK * CHUNK)
        # Keep >= ~8 r-tiles when the tensor is big enough: megacore sharding
        # on v7x (2 TCs) plus enough grid steps to hide pipeline prologue.
        tr_split = max(CHUNK, _round_up(_cdiv(R, 8), CHUNK))
        TR = min(tr_budget, tr_split)
        chunk = CHUNK
    num_r_tiles = _cdiv(R, TR)
    ragged = (num_r_tiles * TR * 128) != numel

    if group_weight.shape[0] == 1:
        w = jnp.ones((G,), jnp.float32)
    else:
        w = group_weight[0].astype(jnp.float32)

    cost = pl.CostEstimate(
        flops=4 * G * numel,
        transcendentals=0,
        bytes_accessed=numel * x_item + G * numel * t_item
        + num_r_tiles * 8 * 128 * 4)

    partials = pl.pallas_call(
        _make_im_loss_kernel(G, TR, chunk, numel, ragged),
        out_shape=jax.ShapeDtypeStruct((num_r_tiles * 8, 128), jnp.float32),
        grid_spec=pltpu.PrefetchScalarGridSpec(
            num_scalar_prefetch=1,                 # group weights -> SMEM
            grid=(num_r_tiles,),
            in_specs=[
                # x tile: loaded once per r-tile, reused for all G groups.
                pl.BlockSpec((TR, 128), lambda r, gw: (r, 0)),
                # all G soft-target tiles for this r-tile in a single block.
                pl.BlockSpec((G, TR, 128), lambda r, gw: (0, r, 0)),
            ],
            # Per-r-tile (8,128) weighted partial sums, written exactly once.
            out_specs=pl.BlockSpec((8, 128), lambda r, gw: (r, 0)),
        ),
        compiler_params=pltpu.CompilerParams(
            dimension_semantics=("parallel",),
            vmem_limit_bytes=40 * 1024 * 1024),
        cost_estimate=cost,
    )(w, xr, trg)

    # Tiny final cross-lane reduce + loss_weight / numel scale in the wrapper
    # (group weights were already applied per-step inside the kernel).
    return jnp.sum(partials) * jnp.float32(loss_weight / numel)


def im_loss_ref(x, soft_targets, group_weight, loss_weight=1.0):
    G = soft_targets.shape[0]
    if group_weight.shape[0] == 1:
        w = jnp.ones((G,), jnp.float32)
    else:
        w = group_weight[0].astype(jnp.float32)
    loss = jnp.float32(0.0)
    for i in range(G):
        mse = jnp.mean((x.astype(jnp.float32) -
                        soft_targets[i].astype(jnp.float32)) ** 2)
        loss = loss + loss_weight * mse * w[i]
    return loss


if __name__ == "__main__":
    key = jax.random.PRNGKey(0)
    k1, k2, k3, k4, k5, k6, k7 = jax.random.split(key, 7)

    # Case 1: f32 NCHW feature map, weighted path (len(group_weight) > 1).
    B, C, H, W = 2, 4, 16, 16        # numel = 2048 (128-aligned, single tile)
    G = 3                            # number of soft targets (teacher groups)
    x = jax.random.normal(k1, (B, C, H, W), dtype=jnp.float32)
    soft_targets = jax.random.normal(k2, (G, B, C, H, W), dtype=jnp.float32)
    group_weight = jax.random.uniform(k3, (2, G), dtype=jnp.float32)

    loss = jax.block_until_ready(
        im_loss_pallas(x, soft_targets, group_weight, loss_weight=1.0))
    ref = im_loss_ref(x, soft_targets, group_weight, loss_weight=1.0)
    assert jnp.allclose(loss, ref, rtol=1e-5, atol=1e-5), (loss, ref)

    # Case 2: unweighted branch (len(group_weight) == 1).
    gw1 = jnp.ones((1, G), jnp.float32)
    loss1 = jax.block_until_ready(im_loss_pallas(x, soft_targets, gw1))
    ref1 = im_loss_ref(x, soft_targets, gw1)
    assert jnp.allclose(loss1, ref1, rtol=1e-5, atol=1e-5), (loss1, ref1)

    # Case 3: bf16 inputs, numel not a multiple of 128 (exercises native-dtype
    # DMA + in-kernel upcast, the small lane pad and the mask path).
    xb = jax.random.normal(k4, (2, 3, 7, 5), dtype=jnp.bfloat16)
    tb = jax.random.normal(k5, (G, 2, 3, 7, 5), dtype=jnp.bfloat16)
    lossb = jax.block_until_ready(
        im_loss_pallas(xb, tb, group_weight, loss_weight=0.5))
    refb = im_loss_ref(xb, tb, group_weight, loss_weight=0.5)
    assert jnp.allclose(lossb, refb, rtol=1e-4, atol=1e-4), (lossb, refb)

    # Case 4: multi-r-tile grid with a partial (over-read + masked) last tile,
    # no wrapper-side padding (numel is a multiple of 128 but not of TR*128).
    xm = jax.random.normal(k6, (2, 8, 48, 48), dtype=jnp.float32)  # 36864 elems
    tm = jax.random.normal(k7, (G, 2, 8, 48, 48), dtype=jnp.float32)
    lossm = jax.block_until_ready(
        im_loss_pallas(xm, tm, group_weight, loss_weight=2.0))
    refm = im_loss_ref(xm, tm, group_weight, loss_weight=2.0)
    assert jnp.allclose(lossm, refm, rtol=1e-5, atol=1e-5), (lossm, refm)

    print("KERNEL_OK")
</pallas_src>

<mosaic_0001>
module attributes {stable_mosaic.version = 11 : i64} {
  func.func @kernel(%arg0: i32, %arg1: memref<3xf32, #tpu.memory_space<smem>>, %arg2: memref<32x128xf32, #tpu.memory_space<vmem>>, %arg3: memref<3x32x128xf32, #tpu.memory_space<vmem>>, %arg4: memref<8x128xf32, #tpu.memory_space<vmem>>) attributes {dimension_semantics = [#tpu.dimension_semantics<parallel>], iteration_bounds = array<i64: 1>, scalar_prefetch = 1 : i64, scratch_operands = 0 : i64, tpu.core_type = #tpu.core_type<tc>, window_params = [{transform_indices = @transform_0, window_bounds = array<i64: 32, 128>}, {transform_indices = @transform_1, window_bounds = array<i64: 3, 32, 128>}, {transform_indices = @transform_2, window_bounds = array<i64: 8, 128>}]} {
    %c0_i32 = arith.constant 0 : i32
    %0 = arith.cmpi slt, %arg0, %c0_i32 : i32
    %1 = arith.extui %0 : i1 to i32
    %c0_i32_0 = arith.constant 0 : i32
    %2 = arith.cmpi ne, %1, %c0_i32_0 : i32
    scf.if %2 {
      %cst = arith.constant 0.000000e+00 : f32
      %6 = vector.broadcast %cst : f32 to vector<8x128xf32>
      %c0_i32_3 = arith.constant 0 : i32
      %c32_i32 = arith.constant 32 : i32
      %7 = arith.muli %c0_i32_3, %c32_i32 : i32
      %8 = tpu.assume_multiple %7, 32 : i32
      %9 = arith.index_cast %8 : i32 to index
      %c0 = arith.constant 0 : index
      %10 = vector.load %arg2[%9, %c0] : memref<32x128xf32, #tpu.memory_space<vmem>>, vector<32x128xf32>
      %cst_4 = arith.constant 0.000000e+00 : f32
      %11 = vector.broadcast %cst_4 : f32 to vector<8x128xf32>
      %c0_5 = arith.constant 0 : index
      %12 = arith.index_cast %8 : i32 to index
      %c0_6 = arith.constant 0 : index
      %13 = vector.load %arg3[%c0_5, %12, %c0_6] : memref<3x32x128xf32, #tpu.memory_space<vmem>>, vector<1x32x128xf32>
      %14 = vector.shape_cast %13 : vector<1x32x128xf32> to vector<32x128xf32>
      %15 = arith.subf %10, %14 : vector<32x128xf32>
      %16 = arith.mulf %15, %15 : vector<32x128xf32>
      %c0_7 = arith.constant 0 : index
      %17 = memref.load %arg1[%c0_7] : memref<3xf32, #tpu.memory_space<smem>>
      %18 = vector.shape_cast %16 : vector<32x128xf32> to vector<4x8x128xf32>
      %cst_8 = arith.constant dense<0.000000e+00> : vector<8x128xf32>
      %19 = vector.multi_reduction <add>, %18, %cst_8 [0] : vector<4x8x128xf32> to vector<8x128xf32>
      %20 = vector.broadcast %17 : f32 to vector<8x128xf32>
      %21 = arith.mulf %20, %19 : vector<8x128xf32>
      %22 = arith.addf %11, %21 : vector<8x128xf32>
      %c1 = arith.constant 1 : index
      %23 = arith.index_cast %8 : i32 to index
      %c0_9 = arith.constant 0 : index
      %24 = vector.load %arg3[%c1, %23, %c0_9] : memref<3x32x128xf32, #tpu.memory_space<vmem>>, vector<1x32x128xf32>
      %25 = vector.shape_cast %24 : vector<1x32x128xf32> to vector<32x128xf32>
      %26 = arith.subf %10, %25 : vector<32x128xf32>
      %27 = arith.mulf %26, %26 : vector<32x128xf32>
      %c1_10 = arith.constant 1 : index
      %28 = memref.load %arg1[%c1_10] : memref<3xf32, #tpu.memory_space<smem>>
      %29 = vector.shape_cast %27 : vector<32x128xf32> to vector<4x8x128xf32>
      %cst_11 = arith.constant dense<0.000000e+00> : vector<8x128xf32>
      %30 = vector.multi_reduction <add>, %29, %cst_11 [0] : vector<4x8x128xf32> to vector<8x128xf32>
      %31 = vector.broadcast %28 : f32 to vector<8x128xf32>
      %32 = arith.mulf %31, %30 : vector<8x128xf32>
      %33 = arith.addf %22, %32 : vector<8x128xf32>
      %c2 = arith.constant 2 : index
      %34 = arith.index_cast %8 : i32 to index
      %c0_12 = arith.constant 0 : index
      %35 = vector.load %arg3[%c2, %34, %c0_12] : memref<3x32x128xf32, #tpu.memory_space<vmem>>, vector<1x32x128xf32>
      %36 = vector.shape_cast %35 : vector<1x32x128xf32> to vector<32x128xf32>
      %37 = arith.subf %10, %36 : vector<32x128xf32>
      %38 = arith.mulf %37, %37 : vector<32x128xf32>
      %c2_13 = arith.constant 2 : index
      %39 = memref.load %arg1[%c2_13] : memref<3xf32, #tpu.memory_space<smem>>
      %40 = vector.shape_cast %38 : vector<32x128xf32> to vector<4x8x128xf32>
      %cst_14 = arith.constant dense<0.000000e+00> : vector<8x128xf32>
      %41 = vector.multi_reduction <add>, %40, %cst_14 [0] : vector<4x8x128xf32> to vector<8x128xf32>
      %42 = vector.broadcast %39 : f32 to vector<8x128xf32>
      %43 = arith.mulf %42, %41 : vector<8x128xf32>
      %44 = arith.addf %33, %43 : vector<8x128xf32>
      %45 = arith.addf %6, %44 : vector<8x128xf32>
      %c1_i32 = arith.constant 1 : i32
      %c0_15 = arith.constant 0 : index
      %c0_16 = arith.constant 0 : index
      %46 = vector.load %arg4[%c0_15, %c0_16] : memref<8x128xf32, #tpu.memory_space<vmem>>, vector<8x128xf32>
      tpu.vector_store %arg4[%c0_15, %c0_16], %45 {strides = array<i32>} : memref<8x128xf32, #tpu.memory_space<vmem>>, vector<8x128xf32>,
    } else {
    }
    %c0_i32_1 = arith.constant 0 : i32
    %3 = arith.cmpi eq, %arg0, %c0_i32_1 : i32
    %4 = arith.extui %3 : i1 to i32
    %c0_i32_2 = arith.constant 0 : i32
    %5 = arith.cmpi ne, %4, %c0_i32_2 : i32
    scf.if %5 {
      %cst = arith.constant 0.000000e+00 : f32
      %6 = vector.broadcast %cst : f32 to vector<8x128xf32>
      %c0_i32_3 = arith.constant 0 : i32
      %c32_i32 = arith.constant 32 : i32
      %7 = arith.muli %c0_i32_3, %c32_i32 : i32
      %8 = tpu.assume_multiple %7, 32 : i32
      %9 = arith.index_cast %8 : i32 to index
      %c0 = arith.constant 0 : index
      %10 = vector.load %arg2[%9, %c0] : memref<32x128xf32, #tpu.memory_space<vmem>>, vector<32x128xf32>
      %11 = tpu.iota {dimensions = array<i32: 0>} : vector<32x128xi32>
      %12 = tpu.iota {dimensions = array<i32: 1>} : vector<32x128xi32>
      %c32_i32_4 = arith.constant 32 : i32
      %13 = arith.muli %arg0, %c32_i32_4 : i32
      %14 = arith.addi %13, %8 : i32
      %15 = vector.broadcast %14 : i32 to vector<32x128xi32>
      %16 = arith.addi %15, %11 : vector<32x128xi32>
      %c16_i32 = arith.constant 16 : i32
      %17 = vector.broadcast %c16_i32 : i32 to vector<32x128xi32>
      %18 = arith.cmpi slt, %16, %17 : vector<32x128xi32>
      %c16_i32_5 = arith.constant 16 : i32
      %19 = vector.broadcast %c16_i32_5 : i32 to vector<32x128xi32>
      %20 = arith.cmpi eq, %16, %19 : vector<32x128xi32>
      %c0_i32_6 = arith.constant 0 : i32
      %21 = vector.broadcast %c0_i32_6 : i32 to vector<32x128xi32>
      %22 = arith.cmpi slt, %12, %21 : vector<32x128xi32>
      %23 = arith.andi %20, %22 : vector<32x128xi1>
      %24 = arith.ori %18, %23 : vector<32x128xi1>
      %cst_7 = arith.constant 0.000000e+00 : f32
      %25 = vector.broadcast %cst_7 : f32 to vector<8x128xf32>
      %c0_8 = arith.constant 0 : index
      %26 = arith.index_cast %8 : i32 to index
      %c0_9 = arith.constant 0 : index
      %27 = vector.load %arg3[%c0_8, %26, %c0_9] : memref<3x32x128xf32, #tpu.memory_space<vmem>>, vector<1x32x128xf32>
      %28 = vector.shape_cast %27 : vector<1x32x128xf32> to vector<32x128xf32>
      %29 = arith.subf %10, %28 : vector<32x128xf32>
      %30 = arith.mulf %29, %29 : vector<32x128xf32>
      %cst_10 = arith.constant 0.000000e+00 : f32
      %31 = vector.broadcast %cst_10 : f32 to vector<32x128xf32>
      %32 = arith.select %24, %30, %31 : vector<32x128xi1>, vector<32x128xf32>
      %c0_11 = arith.constant 0 : index
      %33 = memref.load %arg1[%c0_11] : memref<3xf32, #tpu.memory_space<smem>>
      %34 = vector.shape_cast %32 : vector<32x128xf32> to vector<4x8x128xf32>
      %cst_12 = arith.constant dense<0.000000e+00> : vector<8x128xf32>
      %35 = vector.multi_reduction <add>, %34, %cst_12 [0] : vector<4x8x128xf32> to vector<8x128xf32>
      %36 = vector.broadcast %33 : f32 to vector<8x128xf32>
      %37 = arith.mulf %36, %35 : vector<8x128xf32>
      %38 = arith.addf %25, %37 : vector<8x128xf32>
      %c1 = arith.constant 1 : index
      %39 = arith.index_cast %8 : i32 to index
      %c0_13 = arith.constant 0 : index
      %40 = vector.load %arg3[%c1, %39, %c0_13] : memref<3x32x128xf32, #tpu.memory_space<vmem>>, vector<1x32x128xf32>
      %41 = vector.shape_cast %40 : vector<1x32x128xf32> to vector<32x128xf32>
      %42 = arith.subf %10, %41 : vector<32x128xf32>
      %43 = arith.mulf %42, %42 : vector<32x128xf32>
      %cst_14 = arith.constant 0.000000e+00 : f32
      %44 = vector.broadcast %cst_14 : f32 to vector<32x128xf32>
      %45 = arith.select %24, %43, %44 : vector<32x128xi1>, vector<32x128xf32>
      %c1_15 = arith.constant 1 : index
      %46 = memref.load %arg1[%c1_15] : memref<3xf32, #tpu.memory_space<smem>>
      %47 = vector.shape_cast %45 : vector<32x128xf32> to vector<4x8x128xf32>
      %cst_16 = arith.constant dense<0.000000e+00> : vector<8x128xf32>
      %48 = vector.multi_reduction <add>, %47, %cst_16 [0] : vector<4x8x128xf32> to vector<8x128xf32>
      %49 = vector.broadcast %46 : f32 to vector<8x128xf32>
      %50 = arith.mulf %49, %48 : vector<8x128xf32>
      %51 = arith.addf %38, %50 : vector<8x128xf32>
      %c2 = arith.constant 2 : index
      %52 = arith.index_cast %8 : i32 to index
      %c0_17 = arith.constant 0 : index
      %53 = vector.load %arg3[%c2, %52, %c0_17] : memref<3x32x128xf32, #tpu.memory_space<vmem>>, vector<1x32x128xf32>
      %54 = vector.shape_cast %53 : vector<1x32x128xf32> to vector<32x128xf32>
      %55 = arith.subf %10, %54 : vector<32x128xf32>
      %56 = arith.mulf %55, %55 : vector<32x128xf32>
      %cst_18 = arith.constant 0.000000e+00 : f32
      %57 = vector.broadcast %cst_18 : f32 to vector<32x128xf32>
      %58 = arith.select %24, %56, %57 : vector<32x128xi1>, vector<32x128xf32>
      %c2_19 = arith.constant 2 : index
      %59 = memref.load %arg1[%c2_19] : memref<3xf32, #tpu.memory_space<smem>>
      %60 = vector.shape_cast %58 : vector<32x128xf32> to vector<4x8x128xf32>
      %cst_20 = arith.constant dense<0.000000e+00> : vector<8x128xf32>
      %61 = vector.multi_reduction <add>, %60, %cst_20 [0] : vector<4x8x128xf32> to vector<8x128xf32>
      %62 = vector.broadcast %59 : f32 to vector<8x128xf32>
      %63 = arith.mulf %62, %61 : vector<8x128xf32>
      %64 = arith.addf %51, %63 : vector<8x128xf32>
      %65 = arith.addf %6, %64 : vector<8x128xf32>
      %c1_i32 = arith.constant 1 : i32
      %c0_21 = arith.constant 0 : index
      %c0_22 = arith.constant 0 : index
      %66 = vector.load %arg4[%c0_21, %c0_22] : memref<8x128xf32, #tpu.memory_space<vmem>>, vector<8x128xf32>
      tpu.vector_store %arg4[%c0_21, %c0_22], %65 {strides = array<i32>} : memref<8x128xf32, #tpu.memory_space<vmem>>, vector<8x128xf32>,
    } else {
    }
    return
  }
  func.func @transform_0(%arg0: i32, %arg1: memref<3xf32, #tpu.memory_space<smem>>) -> (i32, i32) {
    %c0_i32 = arith.constant 0 : i32
    %c0_i32_0 = arith.constant 0 : i32
    return %arg0, %c0_i32 : i32, i32
  }
  func.func @transform_1(%arg0: i32, %arg1: memref<3xf32, #tpu.memory_space<smem>>) -> (i32, i32, i32) {
    %c0_i32 = arith.constant 0 : i32
    %c0_i32_0 = arith.constant 0 : i32
    %c0_i32_1 = arith.constant 0 : i32
    return %c0_i32, %arg0, %c0_i32_0 : i32, i32, i32
  }
  func.func @transform_2(%arg0: i32, %arg1: memref<3xf32, #tpu.memory_space<smem>>) -> (i32, i32) {
    %c0_i32 = arith.constant 0 : i32
    %c0_i32_0 = arith.constant 0 : i32
    return %arg0, %c0_i32 : i32, i32
  }
}

</mosaic_0001>

<bundles_post_ra>
// kernel: tpu_custom_call.1
= control target key start
LH: loop header
LB: loop body
LE: loop exit
PB: predicated region body
PF: predicated region fallthrough
CT: control target
= control target key end

     0   :  { %s428_s0 = inlined_call_operand.hbm [shape: f32[3], index: 0, kind: input, shape index: {}]   ;;  %s429_s1 = inlined_call_operand.hbm [shape: f32[16,128], index: 1, kind: input, shape index: {}]   ;;  %s430_s2 = inlined_call_operand.hbm [shape: f32[3,16,128], index: 2, kind: input, shape index: {}]   ;;  %s431_s3 = inlined_call_operand.hbm [shape: f32[8,128], index: 3, kind: output, shape index: {}]  }
   0x1   :  { %s294_s14 = scalar_lea.hbm %s428_s0, 16 }
   0x2   :  { %p295_p0 = scmp.ne.s32.totalorder %s428_s0, %s294_s14  ;;  %p298_p1 = scmp.lt.u32.totalorder %s294_s14, %s428_s0 }
   0x4   :  { %p300_p2 = pnand %p298_p1, %p295_p0 }
   0x6   :  { %303 = shalt.err (!%p300_p2)  }
   0x7   :  { %s356_s19 = smov [#allocation3]  }
   0x8   :  { %9 = dma.hbm_to_smem %s428_s0, 16, %s356_s19, [#allocation2] }
   0x9   :  { %348 = dma.done.wait [#allocation2], 16 }
   0xa   :  { %349 = vsyncadd [#allocation2], 4294967280 }
   0xb   :  { %11 = sfence }
   0xc   :  { %12 = vsyncpa [#allocation5], 0 }
   0xd   :  { %13 = vsyncpa [#allocation8], 0 }
   0xe   :  { %14 = vsyncpa [#allocation6], 0 }
   0xf   :  { %19 = vsyncadd [#allocation5], 256  ;;  %s357_s22 = smov [#allocation4]   ;;  %s304_s26 = scalar_lea.hbm %s429_s1, 256 }
  0x10   :  { %s20_s23 = sshll.u32 %s357_s22, 4  ;;  %p305_p3 = scmp.ne.s32.totalorder %s429_s1, %s304_s26  ;;  %s21_s23 = int_to_ptr.vmem [resolvable:$true] %s20_s23 }
  0x11   :  { %p308_p4 = scmp.lt.u32.totalorder %s304_s26, %s429_s1 }
  0x13   :  { %p310_p5 = pnand %p308_p4, %p305_p3 }
  0x15   :  { %313 = shalt.err (!%p310_p5)
}
  0x16   :  { %s314_s30 = scalar_lea.vmem %s21_s23, 256  ;;  %s318_s4 = scalar_lea.vmem %s21_s23, 512 }
  0x17   :  { %p315_p6 = scmp.ne.s32.totalorder %s21_s23, %s314_s30  ;;  %p319_p7 = scmp.lt.s32.totalorder %s21_s23, %s21_s23 }
  0x18   :  { %p320_p8 = scmp.lt.s32.totalorder %s318_s4, %s314_s30 }
  0x1a   :  { %p321_p9 = por %p320_p8, %p319_p7 }
  0x1c   :  { %p322_p10 = pnand %p321_p9, %p315_p6 }
  0x1e   :  { %325 = shalt.err (!%p322_p10)
}
  0x1f   :  { %s358_s5 = smov 128   ;;  %s359_s6 = smov 8  }
  0x20   :  { %26 = dma.hbm_to_vmem [thread:$0]  %s429_s1, 256, %s21_s23, [#allocation5], %s358_s5, %s358_s5, %s359_s6  }
  0x21   :  { %31 = vsyncadd [#allocation8], 768  ;;  %s36_s9 = sld [smem:[#allocation0]]   ;;  %s360_s10 = smov [#allocation7]  }
  0x22   :  { %s44_s11 = sshll.u32 %s360_s10, 4  ;;  %s361_s12 = smov 256   ;;  %s45_s11 = int_to_ptr.vmem [resolvable:$true] %s44_s11 }
  0x23   :  { %51 = sst [smem:[#allocation11]] %s361_s12  ;;  %s362_s13 = smov 512  }
  0x24   :  { %53 = sst [smem:[#allocation11 + $0x1]] %s362_s13  ;;  %s363_s14 = smov 2  }
  0x25   :  { %55 = sst [smem:[#allocation11 + $0x2]] %s363_s14  ;;  %s364_s16 = smov 128  }
  0x26   :  { %57 = sst [smem:[#allocation11 + $0x3]] %s364_s16  ;;  %s365_s18 = smov 8  }
  0x27   :  { %s275_s15 = sshll.u32 %s36_s9, 26  ;;  %59 = sst [smem:[#allocation11 + $0x4]] %s364_s16 }
  0x28   :  { %s276_s17 = sadd.s32 134217728, %s275_s15  ;;  %61 = sst [smem:[#allocation11 + $0x5]] %s365_s18 }
  0x29   :  { %s366_s19 = smov [#allocation8]   ;;  %s367_s1 = smov [#allocation10]  }
  0x2a   :  { %63 = dma.general %s430_s2, 768, %s45_s11, %s366_s19, %s367_s1, [#allocation11], %s276_s17, 0  }
  0x2b   :  { %350 = dma.done.wait [#allocation5], 512  }
  0x2c   :  { %351 = vsyncadd [#allocation5], 4294966784 }
  0x2d   :  { %352 = dma.done.wait [#allocation8], 1536  }
  0x2e   :  { %353 = vsyncadd [#allocation8], 4294965760  ;;  %s196_s22 = sld [smem:[#allocation3]]  ;;  %s279_s23 = sld [smem:[#allocation3 + $0x1]]  ;;  %v145_v0 = vld [vmem:[#allocation4] sm:$0xff]  ;;  %v146_v1 = vld [vmem:[#allocation4 + $0x8] sm:$0xff] }
  0x2f   :  { %s280_s24 = sld [smem:[#allocation3 + $0x2]]  ;;  %v180_v2 = vld [vmem:[#allocation7] sm:$0xff]  ;;  %v181_v3 = vld [vmem:[#allocation7 + $0x8] sm:$0xff]  ;;  %s368_s2 = smov [#allocation9]  }
  0x30   :  { %v184_v4 = vsub.f32 %v145_v0, %v180_v2  ;;  %v205_v5 = vld [vmem:[#allocation7 + $0x20] sm:$0xff]  ;;  %v206_v6 = vld [vmem:[#allocation7 + $0x28] sm:$0xff]  ;;  %v185_v7 = vsub.f32 %v146_v1, %v181_v3  ;;  %s261_s25 = sshll.u32 %s368_s2, 4  ;;  %s262_s25 = int_to_ptr.vmem [resolvable:$true] %s261_s25 }
  0x31   :  { %v209_v8 = vsub.f32 %v145_v0, %v205_v5  ;;  %v210_v9 = vsub.f32 %v146_v1, %v206_v6  ;;  %v230_v10 = vld [vmem:[#allocation7 + $0x40] sm:$0xff]  ;;  %v231_v11 = vld [vmem:[#allocation7 + $0x48] sm:$0xff]  ;;  %s326_s26 = scalar_lea.vmem %s262_s25, 128  ;;  %p331_p12 = scmp.lt.s32.totalorder %s262_s25, %s262_s25 }
  0x32   :  { %v188_v12 = vmul.f32 %v184_v4, %v184_v4  ;;  %v234_v13 = vsub.f32 %v145_v0, %v230_v10  ;;  %v235_v14 = vsub.f32 %v146_v1, %v231_v11  ;;  %v189_v15 = vmul.f32 %v185_v7, %v185_v7  ;;  %p327_p11 = scmp.ne.s32.totalorder %s262_s25, %s326_s26  ;;  %p332_p13 = scmp.lt.s32.totalorder %s326_s26, %s326_s26 }
  0x33   :  { %v213_v16 = vmul.f32 %v209_v8, %v209_v8  ;;  %v214_v17 = vmul.f32 %v210_v9, %v210_v9 }
  0x34   :  { %v200_v18 = vstv %s196_s22  ;;  %v225_v19 = vstv %s279_s23  ;;  %v238_v20 = vmul.f32 %v234_v13, %v234_v13  ;;  %v239_v21 = vmul.f32 %v235_v14, %v235_v14  ;;  %p333_p0 = por %p332_p13, %p331_p12 }
  0x35   :  { %v197_v22 = vadd.f32 %v189_v15, %v188_v12  ;;  %v222_v23 = vadd.f32 %v214_v17, %v213_v16  ;;  %v250_v24 = vstv %s280_s24 }
  0x36   :  { %v247_v25 = vadd.f32 %v239_v21, %v238_v20  ;;  %p334_p1 = pnand %p333_p0, %p327_p11 }
  0x37   :  { %v201_v26 = vmul.f32 %v200_v18, %v197_v22  ;;  %v226_v27 = vmul.f32 %v225_v19, %v222_v23 }
  0x38   :  { %v251_v28 = vmul.f32 %v250_v24, %v247_v25 }
  0x39   :  { %v227_v29 = vadd.f32 %v226_v27, %v201_v26 }
  0x3b   :  { %v252_v30 = vadd.f32 %v251_v28, %v227_v29 }
  0x3d   :  { %254 = vst [vmem:[#allocation9] sm:$0xff] %v252_v30 }
  0x3e   :  { %337 = shalt.err (!%p334_p1)
}
  0x3f   :  { %s338_s29 = scalar_lea.hbm %s431_s3, 128 }
  0x40   :  { %p339_p2 = scmp.ne.s32.totalorder %s431_s3, %s338_s29  ;;  %p342_p3 = scmp.lt.u32.totalorder %s338_s29, %s431_s3 }
  0x42   :  { %p344_p4 = pnand %p342_p3, %p339_p2 }
  0x44   :  { %347 = shalt.err (!%p344_p4)
}
  0x45   :  { %264 = dma.vmem_to_hbm [thread:$0]  %s262_s25, 128, %s431_s3, [#allocation6]  }
  0x46   :  { %354 = dma.done.wait [#allocation6], 128  }
  0x47   :  { %355 = vsyncadd [#allocation6], 4294967168 }
  0x48   :  { %268 = vsyncpa [#allocation5], 1 }
  0x49   :  { %269 = vsyncpa [#allocation8], 1 }
  0x4a   :  { %270 = vsyncpa [#allocation6], 1 }

</bundles_post_ra>
